<compile_context>
chip_gen: v7x
topology: tpu7x:2x2x1
jax: 0.10.0
libtpu: 0.0.40
codegen_flags: <defaults>
</compile_context>

<pallas_src>
import jax
import jax.numpy as jnp
from jax.experimental import pallas as pl
from jax.experimental.pallas import tpu as pltpu


NEG_SLOPE = 0.01  # nn.LeakyReLU default


def _leaky_relu(x):
    return jnp.where(x > 0, x, NEG_SLOPE * x)


def _cdiv(a, b):
    return -(-a // b)


def _round_up(x, m):
    return _cdiv(x, m) * m


def clinical_mlp_kernel(c_ref, w1_ref, b1_ref, w2_ref, w3_ref, o_ref):
    # Layer 1: Linear + bias + LeakyReLU (bf16 MXU operands, f32 accumulate).
    # c arrives f32; cast to bf16 here so the cast hides under the input DMA.
    c = c_ref[...].astype(jnp.bfloat16)
    h1 = jnp.dot(c, w1_ref[...], preferred_element_type=jnp.float32)
    h1 = _leaky_relu(h1 + b1_ref[...])          # b1 is (1, 128) f32, broadcasts

    # Layer 2: Linear (no bias) + LeakyReLU
    h2 = jnp.dot(h1.astype(w2_ref.dtype), w2_ref[...],
                 preferred_element_type=jnp.float32)
    h2 = _leaky_relu(h2)

    # Layer 3: Linear (no bias) -> narrow (TB, out_pad) tile, cast on store
    o_ref[...] = jnp.dot(h2.astype(w3_ref.dtype), w3_ref[...],
                         preferred_element_type=jnp.float32).astype(o_ref.dtype)


def prepare_params(params):
    """One-time weight prep (hoisted out of the forward path).

    bf16-casts the matmul operands and pads w3's output dim to a multiple of 8
    (lane padding for the narrow output tile).  Bias stays f32 (added after the
    f32 accumulation).
    """
    out_dim = params["w3"].shape[1]
    out_pad = _round_up(out_dim, 8)
    w3 = params["w3"].astype(jnp.bfloat16)
    if out_pad != out_dim:
        w3 = jnp.zeros((w3.shape[0], out_pad), jnp.bfloat16).at[:, :out_dim].set(w3)
    return {
        "w1": params["w1"].astype(jnp.bfloat16),
        "b1": params["b1"].astype(jnp.float32).reshape(1, -1),
        "w2": params["w2"].astype(jnp.bfloat16),
        "w3": w3,
    }


def _batch_tiling(B, tb):
    """Pick (TB, Bp, n_steps): TB multiple of 16, small padding, >=2 steps when possible."""
    B16 = _round_up(max(B, 1), 16)
    # Aim for at least 2 grid steps (v7x megacore) while capping the tile at tb.
    TB = min(tb, max(16, _round_up(_cdiv(B16, 2), 16)))
    n_steps = _cdiv(B16, TB)
    # Re-balance the tile so padding waste stays small (e.g. B=300 -> TB=160, Bp=320).
    TB = _round_up(_cdiv(B16, n_steps), 16)
    return TB, TB * n_steps, n_steps


def clinical_nn_forward(a, c, prepped, *, out_dim=None, tb=4096,
                        out_dtype=jnp.bfloat16):
    """Mirrors ClinicalNN.forward(a, c): `a` (audio) is ignored.

    `prepped` comes from prepare_params().  Output is stored in bf16 by default
    (operands are already bf16-rounded, so f32 writeback buys nothing); pass
    out_dtype=jnp.float32 if strict dtype parity with the torch module matters.
    """
    del a  # unused, exactly as in the PyTorch module

    B, F = c.shape
    w1, b1, w2, w3 = prepped["w1"], prepped["b1"], prepped["w2"], prepped["w3"]
    out_pad = w3.shape[1]
    if out_dim is None:
        out_dim = out_pad

    TB, Bp, n_steps = _batch_tiling(B, tb)
    c_p = c if Bp == B else jnp.zeros((Bp, F), c.dtype).at[:B].set(c)

    const_spec = lambda shape: pl.BlockSpec(shape, lambda i: (0, 0))

    out = pl.pallas_call(
        clinical_mlp_kernel,
        out_shape=jax.ShapeDtypeStruct((Bp, out_pad), out_dtype),
        grid=(n_steps,),
        in_specs=[
            pl.BlockSpec((TB, F), lambda i: (i, 0)),   # batch-tiled activations (f32)
            const_spec(w1.shape),                      # resident weights
            const_spec(b1.shape),
            const_spec(w2.shape),
            const_spec(w3.shape),
        ],
        out_specs=pl.BlockSpec((TB, out_pad), lambda i: (i, 0)),
        compiler_params=pltpu.CompilerParams(
            dimension_semantics=("parallel",)),        # v7x: shard batch on 2 TCs
    )(c_p, w1, b1, w2, w3)

    return out[:B, :out_dim]


def init_params(key, clinical_dim, output_dim):
    """Deterministic synthetic parameters.

    PyTorch nn.Linear stores weight as (out, in); we keep the math x @ W + b
    by generating W directly in (in, out) layout.
    """
    k1, k2, k3, k4 = jax.random.split(key, 4)
    w1 = jax.random.normal(k1, (clinical_dim, 128), jnp.float32) * 0.1
    b1 = jax.random.normal(k2, (1, 128), jnp.float32) * 0.1
    w2 = jax.random.normal(k3, (128, 32), jnp.float32) * 0.1
    w3 = jax.random.normal(k4, (32, output_dim), jnp.float32) * 0.1
    return {"w1": w1, "b1": b1, "w2": w2, "w3": w3}


def reference_forward(c, params):
    """Pure-JAX reference mirroring the kernel's bf16-operand / f32-acc pipeline."""
    w1 = params["w1"].astype(jnp.bfloat16)
    w2 = params["w2"].astype(jnp.bfloat16)
    w3 = params["w3"].astype(jnp.bfloat16)
    h1 = jnp.dot(c.astype(jnp.bfloat16), w1,
                 preferred_element_type=jnp.float32) + params["b1"]
    h1 = _leaky_relu(h1)
    h2 = _leaky_relu(jnp.dot(h1.astype(jnp.bfloat16), w2,
                             preferred_element_type=jnp.float32))
    return jnp.dot(h2.astype(jnp.bfloat16), w3,
                   preferred_element_type=jnp.float32)


if __name__ == "__main__":
    B = 2
    CLINICAL_DIM = 16
    OUTPUT_DIM = 8
    AUDIO_SHAPE = (B, 1, 16, 16)  # unused by the forward pass, kept for parity

    key = jax.random.PRNGKey(0)
    k_a, k_c, k_p = jax.random.split(key, 3)

    a = jax.random.normal(k_a, AUDIO_SHAPE, jnp.float32)
    c = jax.random.normal(k_c, (B, CLINICAL_DIM), jnp.float32)
    params = init_params(k_p, CLINICAL_DIM, OUTPUT_DIM)

    prepped = prepare_params(params)          # one-time weight prep, off the hot path
    out = clinical_nn_forward(a, c, prepped, out_dim=OUTPUT_DIM)
    out = jax.block_until_ready(out)

    ref = reference_forward(c, params)
    assert out.shape == (B, OUTPUT_DIM)
    # bf16 final store round vs. f32 reference -> compare with bf16-level tolerance.
    assert jnp.allclose(out.astype(jnp.float32), ref, atol=1e-2, rtol=1e-2), \
        "mismatch vs reference"

    print("KERNEL_OK")
</pallas_src>

<mosaic_0001>
module attributes {stable_mosaic.version = 11 : i64} {
  func.func @clinical_mlp_kernel(%arg0: i32, %arg1: memref<16x16xf32, #tpu.memory_space<vmem>>, %arg2: memref<16x128xbf16, #tpu.memory_space<vmem>>, %arg3: memref<1x128xf32, #tpu.memory_space<vmem>>, %arg4: memref<128x32xbf16, #tpu.memory_space<vmem>>, %arg5: memref<32x8xbf16, #tpu.memory_space<vmem>>, %arg6: memref<16x8xbf16, #tpu.memory_space<vmem>>) attributes {dimension_semantics = [#tpu.dimension_semantics<parallel>], iteration_bounds = array<i64: 1>, scalar_prefetch = 0 : i64, scratch_operands = 0 : i64, tpu.core_type = #tpu.core_type<tc>, window_params = [{transform_indices = @transform_0, window_bounds = array<i64: 16, 16>}, {pipeline_mode = #tpu.pipeline_mode<synchronous>, transform_indices = @transform_1, window_bounds = array<i64: 16, 128>}, {pipeline_mode = #tpu.pipeline_mode<synchronous>, transform_indices = @transform_2, window_bounds = array<i64: 1, 128>}, {pipeline_mode = #tpu.pipeline_mode<synchronous>, transform_indices = @transform_3, window_bounds = array<i64: 128, 32>}, {pipeline_mode = #tpu.pipeline_mode<synchronous>, transform_indices = @transform_4, window_bounds = array<i64: 32, 8>}, {transform_indices = @transform_5, window_bounds = array<i64: 16, 8>}]} {
    %c0 = arith.constant 0 : index
    %c0_0 = arith.constant 0 : index
    %0 = vector.load %arg1[%c0, %c0_0] : memref<16x16xf32, #tpu.memory_space<vmem>>, vector<16x16xf32>
    %1 = arith.truncf %0 : vector<16x16xf32> to vector<16x16xbf16>
    %c0_1 = arith.constant 0 : index
    %c0_2 = arith.constant 0 : index
    %2 = vector.load %arg2[%c0_1, %c0_2] : memref<16x128xbf16, #tpu.memory_space<vmem>>, vector<16x128xbf16>
    %cst = arith.constant dense<0.000000e+00> : vector<16x128xf32>
    %3 = tpu.matmul %1, %2, %cst {dimension_numbers = #tpu.dot_dimension_numbers<[1], [0], [0], [1], [0, 0, 1, 1], [], []>} : vector<16x16xbf16>, vector<16x128xbf16>, vector<16x128xf32> -> vector<16x128xf32>
    %c0_3 = arith.constant 0 : index
    %c0_4 = arith.constant 0 : index
    %4 = vector.load %arg3[%c0_3, %c0_4] : memref<1x128xf32, #tpu.memory_space<vmem>>, vector<1x128xf32>
    %5 = vector.broadcast %4 : vector<1x128xf32> to vector<16x128xf32>
    %6 = arith.addf %3, %5 : vector<16x128xf32>
    %cst_5 = arith.constant 0.000000e+00 : f32
    %7 = vector.broadcast %cst_5 : f32 to vector<16x128xf32>
    %8 = arith.cmpf ogt, %6, %7 : vector<16x128xf32>
    %cst_6 = arith.constant 0.00999999977 : f32
    %9 = vector.broadcast %cst_6 : f32 to vector<16x128xf32>
    %10 = arith.mulf %9, %6 : vector<16x128xf32>
    %11 = arith.select %8, %6, %10 : vector<16x128xi1>, vector<16x128xf32>
    %12 = arith.truncf %11 : vector<16x128xf32> to vector<16x128xbf16>
    %c0_7 = arith.constant 0 : index
    %c0_8 = arith.constant 0 : index
    %13 = vector.load %arg4[%c0_7, %c0_8] : memref<128x32xbf16, #tpu.memory_space<vmem>>, vector<128x32xbf16>
    %cst_9 = arith.constant dense<0.000000e+00> : vector<16x32xf32>
    %14 = tpu.matmul %12, %13, %cst_9 {dimension_numbers = #tpu.dot_dimension_numbers<[1], [0], [0], [1], [0, 0, 1, 1], [], []>} : vector<16x128xbf16>, vector<128x32xbf16>, vector<16x32xf32> -> vector<16x32xf32>
    %cst_10 = arith.constant 0.000000e+00 : f32
    %15 = vector.broadcast %cst_10 : f32 to vector<16x32xf32>
    %16 = arith.cmpf ogt, %14, %15 : vector<16x32xf32>
    %cst_11 = arith.constant 0.00999999977 : f32
    %17 = vector.broadcast %cst_11 : f32 to vector<16x32xf32>
    %18 = arith.mulf %17, %14 : vector<16x32xf32>
    %19 = arith.select %16, %14, %18 : vector<16x32xi1>, vector<16x32xf32>
    %20 = arith.truncf %19 : vector<16x32xf32> to vector<16x32xbf16>
    %c0_12 = arith.constant 0 : index
    %c0_13 = arith.constant 0 : index
    %21 = vector.load %arg5[%c0_12, %c0_13] : memref<32x8xbf16, #tpu.memory_space<vmem>>, vector<32x8xbf16>
    %cst_14 = arith.constant dense<0.000000e+00> : vector<16x8xf32>
    %22 = tpu.matmul %20, %21, %cst_14 {dimension_numbers = #tpu.dot_dimension_numbers<[1], [0], [0], [1], [0, 0, 1, 1], [], []>} : vector<16x32xbf16>, vector<32x8xbf16>, vector<16x8xf32> -> vector<16x8xf32>
    %23 = arith.truncf %22 : vector<16x8xf32> to vector<16x8xbf16>
    %c0_15 = arith.constant 0 : index
    %c0_16 = arith.constant 0 : index
    %24 = vector.load %arg6[%c0_15, %c0_16] : memref<16x8xbf16, #tpu.memory_space<vmem>>, vector<16x8xbf16>
    tpu.vector_store %arg6[%c0_15, %c0_16], %23 {strides = array<i32>} : memref<16x8xbf16, #tpu.memory_space<vmem>>, vector<16x8xbf16>,
    return
  }
  func.func @transform_0(%arg0: i32) -> (i32, i32) {
    %c0_i32 = arith.constant 0 : i32
    %c0_i32_0 = arith.constant 0 : i32
    return %arg0, %c0_i32 : i32, i32
  }
  func.func @transform_1(%arg0: i32) -> (i32, i32) {
    %c0_i32 = arith.constant 0 : i32
    %c0_i32_0 = arith.constant 0 : i32
    %c0_i32_1 = arith.constant 0 : i32
    return %c0_i32, %c0_i32_0 : i32, i32
  }
  func.func @transform_2(%arg0: i32) -> (i32, i32) {
    %c0_i32 = arith.constant 0 : i32
    %c0_i32_0 = arith.constant 0 : i32
    %c0_i32_1 = arith.constant 0 : i32
    return %c0_i32, %c0_i32_0 : i32, i32
  }
  func.func @transform_3(%arg0: i32) -> (i32, i32) {
    %c0_i32 = arith.constant 0 : i32
    %c0_i32_0 = arith.constant 0 : i32
    %c0_i32_1 = arith.constant 0 : i32
    return %c0_i32, %c0_i32_0 : i32, i32
  }
  func.func @transform_4(%arg0: i32) -> (i32, i32) {
    %c0_i32 = arith.constant 0 : i32
    %c0_i32_0 = arith.constant 0 : i32
    %c0_i32_1 = arith.constant 0 : i32
    return %c0_i32, %c0_i32_0 : i32, i32
  }
  func.func @transform_5(%arg0: i32) -> (i32, i32) {
    %c0_i32 = arith.constant 0 : i32
    %c0_i32_0 = arith.constant 0 : i32
    return %arg0, %c0_i32 : i32, i32
  }
}

</mosaic_0001>

<bundles_post_ra>
// kernel: tpu_custom_call.1
= control target key start
LH: loop header
LB: loop body
LE: loop exit
PB: predicated region body
PF: predicated region fallthrough
CT: control target
= control target key end

     0   :  { %v358_v0 = vmov 0.0   ;;  %vm359_vm0 = vmmov 0   ;;  %vm39_vm1 = vcmask 130048   ;;  %vm219_vm6 = vcmask 261120   ;;  %s438_s1 = inlined_call_operand.vmem [shape: bf16[16,128], index: 1, kind: input, shape index: {}]   ;;  %s439_s0 = inlined_call_operand.vmem [shape: f32[16,16], index: 0, kind: input, shape index: {}]   ;;  %s440_s3 = inlined_call_operand.vmem [shape: bf16[128,32], index: 3, kind: input, shape index: {}]   ;;  %s441_s2 = inlined_call_operand.vmem [shape: f32[1,128], index: 2, kind: input, shape index: {}]   ;;  %s442_s4 = inlined_call_operand.vmem [shape: bf16[32,8], index: 4, kind: input, shape index: {}]   ;;  %s443_s5 = inlined_call_operand.vmem [shape: bf16[16,8], index: 5, kind: output, shape index: {}]  }
   0x1   :  { %311 = vmatprep.subr.bf16.mxu0 %v358_v0  ;;  %v347_v1 = vld [vmem:[%s438_s1] sm:$0xff]   ;;  %313 = vmatprep.mubr.msk.bf16.mxu0 %vm359_vm0, %v358_v0  ;;  %v22_v3 = vld [vmem:[%s439_s0 + $0x8] sm:$0xff]  ;;  %v350_v7 = vld [vmem:[%s440_s3 + $0x10] sm:$0xff]   ;;  %vm272_vm7 = vcmask 60416  }
   0x2   :  { %v21_v2 = vld [vmem:[%s439_s0] sm:$0xff]  ;;  %317 = vmatprep.subr.bf16.mxu1 %v358_v0  ;;  %333 = vmatprep.mubr.msk.bf16.mxu1 %vm359_vm0, %v358_v0  ;;  %v349_v6 = vld [vmem:[%s440_s3 + $0x8] sm:$0xff]   ;;  %v351_v8 = vld [vmem:[%s440_s3 + $0x18] sm:$0xff]  }
   0x3   :  { %312 = vmatpush3.bf16.msra.mxu0 %v347_v1  ;;  %v23_v4 = vpack.c.bf16 %v22_v3, %v21_v2  ;;  %v348_v5 = vld [vmem:[%s440_s3] sm:$0xff]   ;;  %v353_v10 = vld [vmem:[%s440_s3 + $0x28] sm:$0xff]   ;;  %v354_v11 = vld [vmem:[%s440_s3 + $0x30] sm:$0xff]  }
   0x4   :  { %337 = vmatprep.subr.bf16.mxu0 %v358_v0  ;;  %318 = vmatpush3.bf16.msra.mxu1 %v348_v5  ;;  %v352_v9 = vld [vmem:[%s440_s3 + $0x20] sm:$0xff]   ;;  %v355_v12 = vld [vmem:[%s440_s3 + $0x38] sm:$0xff]   ;;  %v357_v26 = vld [vmem:[%s442_s4 + $0x8] sm:$0xff]  }
   0x5   :  { %319 = vmatprep.subr.bf16.mxu1 %v358_v0  ;;  %v279_v13 = vld [vmem:[%s441_s2] ss:$0 sm:$0xff] }
   0x6   :  { %314 = vmatmul.mubr.msk.bf16.vlgmr.msra.gmra.mrb[0].mxu0 %vm39_vm1, %v23_v4  ;;  %v356_v25 = vld [vmem:[%s442_s4] sm:$0xff]  }
   0x7   :  { %341 = vmatprep.mubr.msk.bf16.mxu0 %vm359_vm0, %v358_v0  ;;  %338 = vmatpush3.bf16.msra.mxu0 %v356_v25 }
   0x8   :  { %320 = vmatpush3.bf16.msra.mxu1 %v349_v6  ;;  %339 = vmatprep.subr.bf16.mxu0 %v358_v0 }
   0x9   :  { %321 = vmatprep.subr.bf16.mxu1 %v358_v0 }
   0xb   :  { %340 = vmatpush3.bf16.msra.mxu0 %v357_v26 }
   0xc   :  { %322 = vmatpush3.bf16.msra.mxu1 %v350_v7 }
   0xd   :  { %323 = vmatprep.subr.bf16.mxu1 %v358_v0 }
  0x10   :  { %324 = vmatpush3.bf16.msra.mxu1 %v351_v8 }
  0x11   :  { %325 = vmatprep.subr.bf16.mxu1 %v358_v0 }
  0x14   :  { %326 = vmatpush3.bf16.msra.mxu1 %v352_v9 }
  0x15   :  { %327 = vmatprep.subr.bf16.mxu1 %v358_v0 }
  0x18   :  { %328 = vmatpush3.bf16.msra.mxu1 %v353_v10 }
  0x19   :  { %329 = vmatprep.subr.bf16.mxu1 %v358_v0 }
  0x1c   :  { %330 = vmatpush3.bf16.msra.mxu1 %v354_v11 }
  0x1d   :  { %331 = vmatprep.subr.bf16.mxu1 %v358_v0 }
  0x20   :  { %332 = vmatpush3.bf16.msra.mxu1 %v355_v12 }
  0xd9   :  { %v77_v14 = vpop.f32.mrb[0].mxu0 }
  0xda   :  { %v78_v15 = vadd.f32 %v279_v13, %v77_v14  ;;  %v315_v16 = vpop.f32.mrb[1].mxu0 }
  0xdb   :  { %v80_v17 = vpop.f32.mrb[2].mxu0 }
  0xdc   :  { %v86_v18 = vmul.f32 0.01, %v78_v15  ;;  %v81_v19 = vadd.f32 %v279_v13, %v80_v17  ;;  %v316_v20 = vpop.f32.mrb[3].mxu0  ;;  %vm84_vm2 = vcmp.gt.f32.partialorder %v78_v15, 0.0 }
  0xde   :  { %vm85_vm3 = vcmp.gt.f32.partialorder %v81_v19, 0.0  ;;  %v87_v21 = vmul.f32 0.01, %v81_v19  ;;  %v88_v22 = vsel %vm84_vm2, %v78_v15, %v86_v18 }
  0xe0   :  { %v89_v23 = vsel %vm85_vm3, %v81_v19, %v87_v21 }
  0xe1   :  { %v90_v24 = vpack.c.bf16 %v89_v23, %v88_v22 }
  0xe3   :  { %334 = vmatmul.mubr.bf16.vlgmr.msra.gmra.mrb[0].mxu1 %v90_v24 }
 0x1b6   :  { %v189_v27 = vpop.f32.mrb[0].mxu1 }
 0x1b7   :  { %v198_v28 = vmul.f32 0.01, %v189_v27  ;;  %v335_v29 = vpop.f32.mrb[1].mxu1  ;;  %vm196_vm4 = vcmp.gt.f32.partialorder %v189_v27, 0.0 }
 0x1b8   :  { %v192_v30 = vpop.f32.mrb[2].mxu1 }
 0x1b9   :  { %vm197_vm5 = vcmp.gt.f32.partialorder %v192_v30, 0.0  ;;  %v199_v31 = vmul.f32 0.01, %v192_v30  ;;  %v336_v32 = vpop.f32.mrb[3].mxu1  ;;  %v200_v33 = vsel %vm196_vm4, %v189_v27, %v198_v28 }
 0x1bb   :  { %v201_v34 = vsel %vm197_vm5, %v192_v30, %v199_v31 }
 0x1bc   :  { %v202_v35 = vpack.c.bf16 %v201_v34, %v200_v33 }
 0x1be   :  { %342 = vmatmul.mubr.msk.bf16.vlgmr.msra.gmra.mrb[4].mxu0 %vm219_vm6, %v202_v35 }
 0x291   :  { %v257_v36 = vpop.f32.mrb[4].mxu0 }
 0x292   :  { %v295_v37 = vpack.c.bf16 %v257_v36, %v257_v36  ;;  %v343_v38 = vpop.f32.mrb[5].mxu0 }
 0x293   :  { %v260_v39 = vpop.f32.mrb[6].mxu0 }
 0x294   :  { %273 = vst.msk [vmem:[%s443_s5] sm:$0xf] %vm272_vm7, %v295_v37  ;;  %v296_v40 = vpack.c.bf16 %v260_v39, %v260_v39  ;;  %v344_v41 = vpop.f32.mrb[7].mxu0 }
 0x296   :  { %274 = vst.msk [vmem:[%s443_s5 + $0x4] sm:$0xf] %vm272_vm7, %v296_v40 }

</bundles_post_ra>
